<compile_context>
chip_gen: v7x
topology: tpu7x:2x2x1
jax: 0.10.0
libtpu: 0.0.40
codegen_flags: <defaults>
</compile_context>

<pallas_src>
import jax
import jax.numpy as jnp
from jax.experimental import pallas as pl
from jax.experimental.pallas import tpu as pltpu

_LANES = 128
_SUBLANES = 8
_MAX_TILE_ROWS = 2048        # 2048*128*4B = 1 MiB per f32 stream block
_PAD_X = -1e4                # finite sentinel: with t=0 the loss is exactly 0
                             # (representable & exp-underflows in f32/bf16/f16)


def _round_up(x, m):
    return ((x + m - 1) // m) * m


def _cdiv(a, b):
    return -(-a // b)


def _make_bce_kernel(rows_valid, tile_rows, needs_row_mask):
    """Builds the BCE-with-logits partial-sum kernel.

    x_ref, t_ref : (tile_rows, 128) blocks (any float dtype)
    pw_ref       : (tile_rows, 1) or (tile_rows, 128) f32 (broadcasts over lanes)
    o_ref        : (1, 8, 128) partial-sum block (one per 'parallel' index)
    acc_ref      : (8, 128) f32 VMEM accumulator
    """

    def kernel(x_ref, t_ref, pw_ref, o_ref, acc_ref):
        i = pl.program_id(1)

        @pl.when(i == 0)
        def _():
            acc_ref[...] = jnp.zeros_like(acc_ref)

        x = x_ref[...].astype(jnp.float32)
        t = t_ref[...].astype(jnp.float32)
        pw = pw_ref[...].astype(jnp.float32)

        # Numerically stable BCE-with-logits (matches PyTorch):
        #   log_weight = 1 + (pos_weight - 1) * target
        #   loss = (1 - t) * x + log_weight * (log1p(exp(-|x|)) + max(-x, 0))
        log_weight = 1.0 + (pw - 1.0) * t
        loss = (1.0 - t) * x + log_weight * (
            jnp.log1p(jnp.exp(-jnp.abs(x))) + jnp.maximum(-x, 0.0)
        )

        if needs_row_mask:
            # Zero out rows of the (partial) last block that lie past the end
            # of the flattened input (their VMEM contents are undefined).
            block = pl.program_id(0) * pl.num_programs(1) + i
            row_ids = block * tile_rows + jax.lax.broadcasted_iota(
                jnp.int32, (tile_rows, _LANES), 0
            )
            loss = jnp.where(row_ids < rows_valid, loss, 0.0)

        # VPU-only accumulation into an (8,128) vreg-shaped accumulator.
        acc_ref[...] += jnp.sum(
            loss.reshape(tile_rows // _SUBLANES, _SUBLANES, _LANES), axis=0
        )

        @pl.when(i == pl.num_programs(1) - 1)
        def _():
            o_ref[...] = acc_ref[...].reshape(1, _SUBLANES, _LANES)

    return kernel


def _rowwise_pos_weight(pos_weight, shape, rows):
    """Return a (rows,) f32 vector with one pos_weight value per 128-lane row
    of the flattened input if pos_weight is constant within each row (scalar,
    or constant over trailing dims whose product is a multiple of 128, e.g.
    per-channel (C,1,1) weights on NCHW); otherwise None."""
    if pos_weight.size == 1:
        return jnp.broadcast_to(
            pos_weight.reshape(()).astype(jnp.float32), (rows,)
        )
    nd = len(shape)
    pw_shape = tuple(pos_weight.shape)
    if len(pw_shape) > nd:
        return None
    pw_full = (1,) * (nd - len(pw_shape)) + pw_shape
    trail = 1
    k = nd
    while k > 0 and pw_full[k - 1] == 1:
        trail *= shape[k - 1]
        k -= 1
    if trail % _LANES != 0:
        return None
    lead_shape = tuple(shape[:k])
    pw_lead = jnp.broadcast_to(
        pos_weight.reshape(pw_full[:k]), lead_shape
    ).astype(jnp.float32)
    return jnp.repeat(pw_lead.reshape(-1), trail // _LANES)


def bce_with_logits_mean(logits, target, pos_weight):
    """Equivalent of F.binary_cross_entropy_with_logits(
        logits, target, weight=None, pos_weight=pos_weight, reduction='mean')."""
    shape = logits.shape
    n_valid = 1
    for d in shape:
        n_valid *= d

    rows = max(_cdiv(n_valid, _LANES), 1)
    lane_pad = rows * _LANES - n_valid

    # Stream x / t in their native dtype, flattened to a lane-dense
    # (rows, 128) layout.  Only a sub-128 tail ever gets sentinel-padded
    # (its loss is exactly 0); there is no full-array re-materialisation.
    x_flat = logits.reshape(-1)
    t_flat = target.reshape(-1)
    if lane_pad:
        x_flat = jnp.pad(x_flat, (0, lane_pad), constant_values=_PAD_X)
        t_flat = jnp.pad(t_flat, (0, lane_pad), constant_values=0)
    x2 = x_flat.reshape(rows, _LANES)
    t2 = t_flat.reshape(rows, _LANES)

    # pos_weight: stream a tiny per-row column when possible; otherwise fall
    # back to a full broadcast stream (still correct, just more HBM bytes).
    pos_weight = jnp.asarray(pos_weight)
    row_pw = _rowwise_pos_weight(pos_weight, shape, rows)
    if row_pw is not None:
        pw_arr = row_pw.reshape(rows, 1)
        pw_block_lanes = 1
    else:
        pw_flat = jnp.broadcast_to(pos_weight, shape).astype(jnp.float32).reshape(-1)
        if lane_pad:
            pw_flat = jnp.pad(pw_flat, (0, lane_pad), constant_values=1.0)
        pw_arr = pw_flat.reshape(rows, _LANES)
        pw_block_lanes = _LANES

    # Row tiling: (8,128)-aligned blocks; any partial last block is handled
    # with the in-kernel row mask instead of padding the streamed arrays.
    tile_rows = min(_MAX_TILE_ROWS, _round_up(rows, _SUBLANES))
    total_tiles = _cdiv(rows, tile_rows)
    needs_row_mask = total_tiles * tile_rows != rows
    n_par = 2 if (total_tiles >= 2 and total_tiles % 2 == 0) else 1
    tiles_per_par = total_tiles // n_par

    def row_map(p, i):
        return (p * tiles_per_par + i, 0)

    kernel = _make_bce_kernel(rows, tile_rows, needs_row_mask)

    partial = pl.pallas_call(
        kernel,
        out_shape=jax.ShapeDtypeStruct((n_par, _SUBLANES, _LANES), jnp.float32),
        grid_spec=pltpu.PrefetchScalarGridSpec(
            num_scalar_prefetch=0,
            grid=(n_par, tiles_per_par),
            in_specs=[
                pl.BlockSpec((tile_rows, _LANES), row_map),
                pl.BlockSpec((tile_rows, _LANES), row_map),
                pl.BlockSpec((tile_rows, pw_block_lanes), row_map),
            ],
            out_specs=pl.BlockSpec(
                (1, _SUBLANES, _LANES), lambda p, i: (p, 0, 0)
            ),
            scratch_shapes=[pltpu.VMEM((_SUBLANES, _LANES), jnp.float32)],
        ),
        compiler_params=pltpu.CompilerParams(
            dimension_semantics=("parallel", "arbitrary"),
        ),
    )(x2, t2, pw_arr)

    # Tiny final reduce (<= 2*8*128 elements) + mean normalization in JAX.
    return jnp.sum(partial) * (1.0 / float(n_valid))


def _reference(logits, target, pos_weight):
    pw = jnp.broadcast_to(jnp.asarray(pos_weight), logits.shape).astype(jnp.float32)
    x = logits.astype(jnp.float32)
    t = target.astype(jnp.float32)
    log_weight = 1.0 + (pw - 1.0) * t
    loss = (1.0 - t) * x + log_weight * (
        jnp.log1p(jnp.exp(-jnp.abs(x))) + jnp.maximum(-x, 0.0)
    )
    return jnp.mean(loss)


if __name__ == "__main__":
    key = jax.random.PRNGKey(0)

    def check(shape, pw_shape, k):
        k1, k2, k3 = jax.random.split(k, 3)
        logits = jax.random.normal(k1, shape, dtype=jnp.float32)
        target = (jax.random.uniform(k2, shape) > 0.5).astype(jnp.float32)
        pos_weight = jax.random.uniform(
            k3, pw_shape, minval=0.5, maxval=2.0
        ).astype(jnp.float32)
        out = jax.block_until_ready(bce_with_logits_mean(logits, target, pos_weight))
        ref = jax.block_until_ready(_reference(logits, target, pos_weight))
        assert jnp.allclose(out, ref, rtol=1e-4, atol=1e-5), (shape, out, ref)

    keys = jax.random.split(key, 4)
    # 1) Small NCHW with per-channel pos_weight (rowwise pos_weight stream).
    check((2, 4, 16, 16), (4, 1, 1), keys[0])
    # 2) Multi-tile case: partial last block (in-kernel row mask) + 2-way
    #    'parallel' row-block split, per-channel pos_weight.
    check((2, 4, 312, 128), (4, 1, 1), keys[1])
    # 3) Ragged size (not a multiple of 128) with a scalar pos_weight:
    #    sentinel lane-padding + single partial block.
    check((3, 3, 7, 5), (), keys[2])
    # 4) Elementwise pos_weight (full-stream fallback path).
    check((2, 4, 16, 16), (2, 4, 16, 16), keys[3])

    print("KERNEL_OK")
</pallas_src>

<mosaic_0001>
module attributes {stable_mosaic.version = 11 : i64} {
  func.func @kernel(%arg0: i32, %arg1: i32, %arg2: memref<16x128xf32, #tpu.memory_space<vmem>>, %arg3: memref<16x128xf32, #tpu.memory_space<vmem>>, %arg4: memref<16x1xf32, #tpu.memory_space<vmem>>, %arg5: memref<1x8x128xf32, #tpu.memory_space<vmem>>, %arg6: memref<8x128xf32, #tpu.memory_space<vmem>>) attributes {dimension_semantics = [#tpu.dimension_semantics<parallel>, #tpu.dimension_semantics<arbitrary>], iteration_bounds = array<i64: 1, 1>, scalar_prefetch = 0 : i64, scratch_operands = 1 : i64, tpu.core_type = #tpu.core_type<tc>, window_params = [{transform_indices = @transform_0, window_bounds = array<i64: 16, 128>}, {transform_indices = @transform_1, window_bounds = array<i64: 16, 128>}, {transform_indices = @transform_2, window_bounds = array<i64: 16, 1>}, {transform_indices = @transform_3, window_bounds = array<i64: 1, 8, 128>}]} {
    %c0_i32 = arith.constant 0 : i32
    %0 = arith.cmpi eq, %arg1, %c0_i32 : i32
    %1 = arith.extui %0 : i1 to i32
    %c0_i32_0 = arith.constant 0 : i32
    %2 = arith.cmpi ne, %1, %c0_i32_0 : i32
    scf.if %2 {
      %cst_18 = arith.constant 0.000000e+00 : f32
      %35 = vector.broadcast %cst_18 : f32 to vector<8x128xf32>
      %c0_19 = arith.constant 0 : index
      %c0_20 = arith.constant 0 : index
      %36 = vector.load %arg6[%c0_19, %c0_20] : memref<8x128xf32, #tpu.memory_space<vmem>>, vector<8x128xf32>
      tpu.vector_store %arg6[%c0_19, %c0_20], %35 {strides = array<i32>} : memref<8x128xf32, #tpu.memory_space<vmem>>, vector<8x128xf32>,
    } else {
    }
    %c0 = arith.constant 0 : index
    %c0_1 = arith.constant 0 : index
    %3 = vector.load %arg2[%c0, %c0_1] : memref<16x128xf32, #tpu.memory_space<vmem>>, vector<16x128xf32>
    %c0_2 = arith.constant 0 : index
    %c0_3 = arith.constant 0 : index
    %4 = vector.load %arg3[%c0_2, %c0_3] : memref<16x128xf32, #tpu.memory_space<vmem>>, vector<16x128xf32>
    %c0_4 = arith.constant 0 : index
    %c0_5 = arith.constant 0 : index
    %5 = vector.load %arg4[%c0_4, %c0_5] : memref<16x1xf32, #tpu.memory_space<vmem>>, vector<16x1xf32>
    %cst = arith.constant 1.000000e+00 : f32
    %6 = vector.broadcast %cst : f32 to vector<16x1xf32>
    %7 = arith.subf %5, %6 : vector<16x1xf32>
    %8 = vector.broadcast %7 : vector<16x1xf32> to vector<16x128xf32>
    %9 = arith.mulf %8, %4 : vector<16x128xf32>
    %cst_6 = arith.constant 1.000000e+00 : f32
    %10 = vector.broadcast %cst_6 : f32 to vector<16x128xf32>
    %11 = arith.addf %10, %9 : vector<16x128xf32>
    %cst_7 = arith.constant 1.000000e+00 : f32
    %12 = vector.broadcast %cst_7 : f32 to vector<16x128xf32>
    %13 = arith.subf %12, %4 : vector<16x128xf32>
    %14 = arith.mulf %13, %3 : vector<16x128xf32>
    %15 = math.absf %3 : vector<16x128xf32>
    %cst_8 = arith.constant 0.000000e+00 : f32
    %16 = vector.broadcast %cst_8 : f32 to vector<16x128xf32>
    %17 = arith.subf %16, %15 : vector<16x128xf32>
    %18 = math.exp %17 : vector<16x128xf32>
    %19 = math.log1p %18 : vector<16x128xf32>
    %cst_9 = arith.constant 0.000000e+00 : f32
    %20 = vector.broadcast %cst_9 : f32 to vector<16x128xf32>
    %21 = arith.subf %20, %3 : vector<16x128xf32>
    %cst_10 = arith.constant 0.000000e+00 : f32
    %22 = vector.broadcast %cst_10 : f32 to vector<16x128xf32>
    %23 = arith.maximumf %21, %22 : vector<16x128xf32>
    %24 = arith.addf %19, %23 : vector<16x128xf32>
    %25 = arith.mulf %11, %24 : vector<16x128xf32>
    %26 = arith.addf %14, %25 : vector<16x128xf32>
    %c0_11 = arith.constant 0 : index
    %c0_12 = arith.constant 0 : index
    %27 = vector.load %arg6[%c0_11, %c0_12] : memref<8x128xf32, #tpu.memory_space<vmem>>, vector<8x128xf32>
    %28 = vector.shape_cast %26 : vector<16x128xf32> to vector<2x8x128xf32>
    %cst_13 = arith.constant dense<0.000000e+00> : vector<8x128xf32>
    %29 = vector.multi_reduction <add>, %28, %cst_13 [0] : vector<2x8x128xf32> to vector<8x128xf32>
    %30 = arith.addf %27, %29 : vector<8x128xf32>
    %c0_14 = arith.constant 0 : index
    %c0_15 = arith.constant 0 : index
    %31 = vector.load %arg6[%c0_14, %c0_15] : memref<8x128xf32, #tpu.memory_space<vmem>>, vector<8x128xf32>
    tpu.vector_store %arg6[%c0_14, %c0_15], %30 {strides = array<i32>} : memref<8x128xf32, #tpu.memory_space<vmem>>, vector<8x128xf32>,
    %c0_i32_16 = arith.constant 0 : i32
    %32 = arith.cmpi eq, %arg1, %c0_i32_16 : i32
    %33 = arith.extui %32 : i1 to i32
    %c0_i32_17 = arith.constant 0 : i32
    %34 = arith.cmpi ne, %33, %c0_i32_17 : i32
    scf.if %34 {
      %c0_18 = arith.constant 0 : index
      %c0_19 = arith.constant 0 : index
      %35 = vector.load %arg6[%c0_18, %c0_19] : memref<8x128xf32, #tpu.memory_space<vmem>>, vector<8x128xf32>
      %36 = vector.shape_cast %35 : vector<8x128xf32> to vector<1x8x128xf32>
      %c0_20 = arith.constant 0 : index
      %c0_21 = arith.constant 0 : index
      %c0_22 = arith.constant 0 : index
      %37 = vector.load %arg5[%c0_20, %c0_21, %c0_22] : memref<1x8x128xf32, #tpu.memory_space<vmem>>, vector<1x8x128xf32>
      tpu.vector_store %arg5[%c0_20, %c0_21, %c0_22], %36 {strides = array<i32>} : memref<1x8x128xf32, #tpu.memory_space<vmem>>, vector<1x8x128xf32>,
    } else {
    }
    return
  }
  func.func @transform_0(%arg0: i32, %arg1: i32) -> (i32, i32) {
    %c1_i32 = arith.constant 1 : i32
    %0 = arith.muli %arg0, %c1_i32 : i32
    %1 = arith.addi %0, %arg1 : i32
    %c0_i32 = arith.constant 0 : i32
    %c0_i32_0 = arith.constant 0 : i32
    return %1, %c0_i32 : i32, i32
  }
  func.func @transform_1(%arg0: i32, %arg1: i32) -> (i32, i32) {
    %c1_i32 = arith.constant 1 : i32
    %0 = arith.muli %arg0, %c1_i32 : i32
    %1 = arith.addi %0, %arg1 : i32
    %c0_i32 = arith.constant 0 : i32
    %c0_i32_0 = arith.constant 0 : i32
    return %1, %c0_i32 : i32, i32
  }
  func.func @transform_2(%arg0: i32, %arg1: i32) -> (i32, i32) {
    %c1_i32 = arith.constant 1 : i32
    %0 = arith.muli %arg0, %c1_i32 : i32
    %1 = arith.addi %0, %arg1 : i32
    %c0_i32 = arith.constant 0 : i32
    %c0_i32_0 = arith.constant 0 : i32
    return %1, %c0_i32 : i32, i32
  }
  func.func @transform_3(%arg0: i32, %arg1: i32) -> (i32, i32, i32) {
    %c0_i32 = arith.constant 0 : i32
    %c0_i32_0 = arith.constant 0 : i32
    %c0_i32_1 = arith.constant 0 : i32
    return %arg0, %c0_i32, %c0_i32_0 : i32, i32, i32
  }
}

</mosaic_0001>

<bundles_post_ra>
// kernel: tpu_custom_call.1
= control target key start
LH: loop header
LB: loop body
LE: loop exit
PB: predicated region body
PF: predicated region fallthrough
CT: control target
= control target key end

     0   :  { %8 = vsyncpa [#allocation4], 0  ;;  %s307_s0 = inlined_call_operand.vmem [shape: f32[16,128], index: 0, kind: input, shape index: {}]   ;;  %s308_s1 = inlined_call_operand.hbm [shape: f32[16,128], index: 1, kind: input, shape index: {}]   ;;  %s309_s2 = inlined_call_operand.vmem [shape: f32[16,1], index: 2, kind: input, shape index: {}]   ;;  %s310_s3 = inlined_call_operand.hbm [shape: f32[1,8,128], index: 3, kind: output, shape index: {}]  }
   0x1   :  { %9 = vsyncpa [#allocation5], 0  ;;  %s246_s12 = smov [#allocation3]   ;;  %s198_s16 = scalar_lea.hbm %s308_s1, 256 }
   0x2   :  { %s29_s13 = sshll.u32 %s246_s12, 4  ;;  %p199_p0 = scmp.ne.s32.totalorder %s308_s1, %s198_s16  ;;  %s30_s13 = int_to_ptr.vmem [resolvable:$true] %s29_s13 }
   0x3   :  { %p202_p1 = scmp.lt.u32.totalorder %s198_s16, %s308_s1 }
   0x5   :  { %p204_p2 = pnand %p202_p1, %p199_p0 }
   0x7   :  { %207 = shalt.err (!%p204_p2)
}
   0x8   :  { %s208_s21 = scalar_lea.vmem %s30_s13, 256  ;;  %p213_p4 = scmp.lt.s32.totalorder %s30_s13, %s30_s13 }
   0x9   :  { %p209_p3 = scmp.ne.s32.totalorder %s30_s13, %s208_s21  ;;  %p214_p5 = scmp.lt.s32.totalorder %s208_s21, %s208_s21 }
   0xb   :  { %p215_p6 = por %p214_p5, %p213_p4 }
   0xd   :  { %p216_p7 = pnand %p215_p6, %p209_p3 }
   0xf   :  { %219 = shalt.err (!%p216_p7)
}
  0x10   :  { %s247_s22 = smov 128   ;;  %s248_s23 = smov 8  }
  0x11   :  { %35 = dma.hbm_to_vmem [thread:$0]  %s308_s1, 256, %s30_s13, [#allocation4], %s247_s22, %s247_s22, %s248_s23  }
  0x12   :  { %242 = dma.done.wait [#allocation4], 256  }
  0x13   :  { %243 = vsyncadd [#allocation4], 4294967040  ;;  %v249_v0 = vmov 0   ;;  %v88_v1 = vld [vmem:[%s309_s2] sm:$0xff]  ;;  %v89_v2 = vld [vmem:[%s309_s2 + $0x8] sm:$0xff] }
  0x14   :  { %189 = vset.pattern.permute.xlu0 %v249_v0  ;;  %v182_v3 = vadd.f32 -1.0, %v88_v1  ;;  %v183_v4 = vadd.f32 -1.0, %v89_v2  ;;  %v84_v5 = vld [vmem:[%s307_s0] sm:$0xff]  ;;  %v85_v6 = vld [vmem:[%s307_s0 + $0x8] sm:$0xff]  ;;  %s250_s0 = smov [#allocation6]  }
  0x15   :  { %v110_v7 = vand.u32 2147483647, %v84_v5  ;;  %v111_v8 = vand.u32 2147483647, %v85_v6  ;;  %v136_v24 = vsub.f32 0.0, %v84_v5  ;;  %v137_v28 = vsub.f32 0.0, %v85_v6 }
  0x16   :  { %94 = vperm.xlu0 %189, %v182_v3   ;;  %v86_v29 = vld [vmem:[#allocation3] sm:$0xff]  ;;  %v87_v37 = vld [vmem:[#allocation3 + $0x8] sm:$0xff]  ;;  %s161_s2 = sshll.u32 %s250_s0, 4  ;;  %s162_s2 = int_to_ptr.vmem [resolvable:$true] %s161_s2 }
  0x17   :  { %v112_v9 = vsub.f32 0.0, %v110_v7  ;;  %v113_v10 = vsub.f32 0.0, %v111_v8  ;;  %v138_v32 = vmax.f32 %v136_v24, 0.0  ;;  %v139_v36 = vmax.f32 %v137_v28, 0.0  ;;  %s220_s6 = scalar_lea.vmem %s162_s2, 128  ;;  %p225_p9 = scmp.lt.s32.totalorder %s162_s2, %s162_s2 }
  0x18   :  { %v106_v40 = vsub.f32 1.0, %v86_v29  ;;  %v107_v42 = vsub.f32 1.0, %v87_v37  ;;  %p221_p8 = scmp.ne.s32.totalorder %s162_s2, %s220_s6  ;;  %p226_p10 = scmp.lt.s32.totalorder %s220_s6, %s220_s6 }
  0x19   :  { %v114_v11 = vmul.f32 1.442695, %v112_v9  ;;  %v116_v12 = vmul.f32 1.442695, %v113_v10 }
  0x1a   :  { %99 = vperm.xlu0 %189, %v183_v4   ;;  %v108_v46 = vmul.f32 %v106_v40, %v84_v5  ;;  %v109_v49 = vmul.f32 %v107_v42, %v85_v6  ;;  %p227_p11 = por %p226_p10, %p225_p9 }
  0x1b   :  { %190 = vpow2.f32 %v114_v11 }
  0x1c   :  { %192 = vpow2.f32 %v116_v12  ;;  %p228_p12 = pnand %p227_p11, %p221_p8 }
  0x25   :  { %v191_v13 = vpop.eup %190 }
  0x26   :  { %v193_v14 = vpop.eup %192  ;;  %v118_v15 = vadd.f32 1.0, %v191_v13  ;;  %v121_v17 = vmul.f32 -0.5, %v191_v13  ;;  %v124_v21 = vand.u32 2147483647, %v191_v13 }
  0x27   :  { %v127_v16 = vadd.f32 1.0, %v193_v14  ;;  %v130_v18 = vmul.f32 -0.5, %v193_v14  ;;  %v133_v25 = vand.u32 2147483647, %v193_v14 }
  0x28   :  { %194 = vlog2.f32 %v118_v15  ;;  %v122_v19 = vadd.f32 1.0, %v121_v17  ;;  %vm125_vm0 = vcmp.lt.f32.partialorder %v124_v21, 0.0004427343 }
  0x29   :  { %196 = vlog2.f32 %v127_v16  ;;  %v131_v22 = vadd.f32 1.0, %v130_v18  ;;  %vm134_vm1 = vcmp.lt.f32.partialorder %v133_v25, 0.0004427343 }
  0x2a   :  { %v123_v27 = vmul.f32 %v191_v13, %v122_v19 }
  0x2b   :  { %v132_v31 = vmul.f32 %v193_v14, %v131_v22 }
  0x32   :  { %v195_v20 = vpop.eup %194 }
  0x33   :  { %v197_v23 = vpop.eup %196  ;;  %v120_v26 = vmul.f32 0.6931472, %v195_v20 }
  0x34   :  { %v129_v30 = vmul.f32 0.6931472, %v197_v23 }
  0x35   :  { %v126_v34 = vsel %vm125_vm0, %v123_v27, %v120_v26 }
  0x36   :  { %v135_v38 = vsel %vm134_vm1, %v132_v31, %v129_v30  ;;  %v140_v41 = vadd.f32 %v138_v32, %v126_v34 }
  0x37   :  { %v141_v45 = vadd.f32 %v139_v36, %v135_v38 }
  0x95   :  { %v95_v33 = vpop.permute.xlu0 %94 }
  0x96   :  { %v102_v35 = vmul.f32 %v95_v33, %v86_v29 }
  0x98   :  { %v104_v39 = vadd.f32 1.0, %v102_v35 }
  0x99   :  { %v100_v43 = vpop.permute.xlu0 %99 }
  0x9a   :  { %v103_v44 = vmul.f32 %v100_v43, %v87_v37  ;;  %v142_v47 = vmul.f32 %v140_v41, %v104_v39 }
  0x9c   :  { %v105_v48 = vadd.f32 1.0, %v103_v44  ;;  %v144_v51 = vadd.f32 %v142_v47, %v108_v46 }
  0x9e   :  { %v143_v50 = vmul.f32 %v141_v45, %v105_v48 }
  0xa0   :  { %v145_v52 = vadd.f32 %v143_v50, %v109_v49 }
  0xa2   :  { %v147_v53 = vadd.f32 %v145_v52, %v144_v51 }
  0xa4   :  { %154 = vst [vmem:[#allocation6] sm:$0xff] %v147_v53 }
  0xa5   :  { %231 = shalt.err (!%p228_p12)
}
  0xa6   :  { %s232_s9 = scalar_lea.hbm %s310_s3, 128 }
  0xa7   :  { %p233_p13 = scmp.ne.s32.totalorder %s310_s3, %s232_s9  ;;  %p236_p0 = scmp.lt.u32.totalorder %s232_s9, %s310_s3 }
  0xa9   :  { %p238_p1 = pnand %p236_p0, %p233_p13 }
  0xab   :  { %241 = shalt.err (!%p238_p1)
}
  0xac   :  { %164 = dma.vmem_to_hbm [thread:$0]  %s162_s2, 128, %s310_s3, [#allocation5]  }
  0xad   :  { %244 = dma.done.wait [#allocation5], 128  }
  0xae   :  { %245 = vsyncadd [#allocation5], 4294967168 }
  0xaf   :  { %168 = vsyncpa [#allocation4], 1 }
  0xb0   :  { %169 = vsyncpa [#allocation5], 1 }

</bundles_post_ra>
